<compile_context>
chip_gen: v7x
topology: tpu7x:2x2x1
jax: 0.10.0
libtpu: 0.0.40
codegen_flags: <defaults>
</compile_context>

<pallas_src>
import jax
import jax.numpy as jnp
from jax.experimental import pallas as pl
from jax.experimental.pallas import tpu as pltpu

_MIB = 1024 * 1024


def _vmem_capacity_bytes():
    """Physical VMEM capacity via the exact trace-time query (with a safe fallback)."""
    try:
        cap = int(pltpu.get_tpu_info().vmem_capacity_bytes)
        if cap > 0:
            return cap
    except Exception:  # pragma: no cover - query unavailable (e.g. interpret mode)
        pass
    return 64 * _MIB  # v7x-sized fallback; a safe under-estimate for v5e/v6e.


def _largest_divisor_leq(n, cap):
    cap = int(max(1, min(n, cap)))
    for d in range(cap, 0, -1):
        if n % d == 0:
            return d
    return 1


def se_block(x, w1, w2, *, force_hw_chunk=None):
    """SEBlock forward. x: (B, C, H, W). w1: (Nse, Ne=C). w2: (Ne=C, Nse)."""
    B, C, H, W = x.shape
    Nse, Ne = w1.shape
    assert Ne == C and w2.shape == (Ne, Nse)

    HW = H * W
    x_flat = x.reshape(B, C, HW)          # free reshape: no pad, no extra HBM pass
    w1t = w1.T                            # (C, Nse)  one-time transpose in XLA
    w2t = w2.T                            # (Nse, C)
    inv_hw = 1.0 / float(HW)

    itemsize = jnp.dtype(x.dtype).itemsize
    per_sample = C * HW * itemsize        # one sample's (C, HW) slab in bytes

    capacity = _vmem_capacity_bytes()
    # Budget for the 4 double-buffered data tiles (x in + out): ~44 MiB of v7x's
    # 64 MiB (headroom for weights/semaphores/compiler scratch), capped at 48 MiB
    # on v5e/v6e -- tiles beyond a few MiB buy nothing at the HBM roofline.
    data_budget = min((capacity * 11) // 16, 48 * _MIB)
    weight_bytes = 2 * C * Nse * jnp.dtype(w1.dtype).itemsize
    # Raise the scoped VMEM limit explicitly (16/32 MiB defaults are not a HW
    # limit on v5e/v6e); stay well under physical capacity on v7x.
    vmem_limit = int(min(capacity - 4 * _MIB,
                         max(32 * _MIB, data_budget + 2 * weight_bytes + 4 * _MIB)))

    target_tile = 4 * _MIB                # ~4 MiB per data tile is near roofline

    use_chunked = (4 * per_sample > data_budget) or (force_hw_chunk is not None)

    if not use_chunked:
        # ---------------- Fused single-pass path ----------------
        tb_cap = min(B, 1024,
                     max(1, target_tile // per_sample),
                     max(1, data_budget // (4 * per_sample)))
        # Keep at least min(4, B) grid steps: pipeline depth + both v7x cores busy.
        tb_cap = min(tb_cap, max(1, B // min(4, B)))
        TB = _largest_divisor_leq(B, tb_cap)     # divisor of B: no batch pad, no ragged tail

        def fused_kernel(x_ref, w1t_ref, w2t_ref, o_ref):
            xv = x_ref[...]                                            # (TB, C, HW)
            pooled = jnp.sum(xv, axis=-1, dtype=jnp.float32) * inv_hw  # (TB, C) f32
            h = jnp.dot(pooled, w1t_ref[...], preferred_element_type=jnp.float32)
            h = jnp.maximum(h, 0.0)
            s = jnp.dot(h, w2t_ref[...], preferred_element_type=jnp.float32)
            scale = jax.nn.sigmoid(s).astype(o_ref.dtype)              # (TB, C)
            o_ref[...] = xv * scale[:, :, None]

        out_flat = pl.pallas_call(
            fused_kernel,
            out_shape=jax.ShapeDtypeStruct((B, C, HW), x.dtype),
            grid_spec=pltpu.PrefetchScalarGridSpec(
                num_scalar_prefetch=0,
                grid=(B // TB,),
                in_specs=[
                    pl.BlockSpec((TB, C, HW), lambda b: (b, 0, 0)),
                    # Grid-invariant index maps: weights DMA'd once per core.
                    pl.BlockSpec((C, Nse), lambda b: (0, 0)),
                    pl.BlockSpec((Nse, C), lambda b: (0, 0)),
                ],
                out_specs=pl.BlockSpec((TB, C, HW), lambda b: (b, 0, 0)),
            ),
            compiler_params=pltpu.CompilerParams(
                dimension_semantics=("parallel",),
                vmem_limit_bytes=vmem_limit),
        )(x_flat, w1t, w2t)
        return out_flat.reshape(B, C, H, W)

    # ---------------- Spatially-chunked two-pass fallback ----------------
    # One sample's (C, HW) slab is too big for the fused kernel's VMEM budget
    # (or chunking was forced for testing).  Pass 1: pooled-sum accumulator over
    # HW chunks + FC/sigmoid finalize into a lane-dense (B, 1, C) scale.
    # Pass 2: stream x again and rescale.  Costs one extra read of x, keeps
    # double buffering and bounded VMEM.
    min_hwc = min(128, HW)
    tb_cap = min(B, 1024, max(1, data_budget // (4 * C * min_hwc * itemsize)))
    TB = _largest_divisor_leq(B, tb_cap)

    if force_hw_chunk is not None:
        HWC = int(force_hw_chunk)
    else:
        hwc_cap = max(1, min(data_budget // (4 * TB * C * itemsize),
                             target_tile // max(1, TB * C * itemsize)))
        HWC = (hwc_cap // 128) * 128
    if HW <= 128:
        HWC = HW                              # full dim: exempt from the 128 rule
    else:
        HWC = max(128, min(HWC, (HW // 128) * 128))   # multiple of 128; masked tail handles the rest
    # TODO(synk): if even (TB=1, HWC=128) overflows the budget (C beyond ~20k f32
    # channels), additionally chunk the channel axis of both passes.

    nb = B // TB
    nk = pl.cdiv(HW, HWC)

    def pool_kernel(x_ref, w1t_ref, w2t_ref, scale_ref, acc_ref):
        k = pl.program_id(1)

        @pl.when(k == 0)
        def _():
            acc_ref[...] = jnp.zeros_like(acc_ref)

        xv = x_ref[...]                                        # (TB, C, HWC)
        # Mask the ragged tail chunk: reads past HW are unspecified values.
        lane = jax.lax.broadcasted_iota(jnp.int32, xv.shape, 2)
        valid = lane < (HW - k * HWC)
        acc_ref[...] += jnp.sum(jnp.where(valid, xv.astype(jnp.float32), 0.0),
                                axis=-1)                       # (TB, C) f32

        @pl.when(k == nk - 1)
        def _():
            pooled = acc_ref[...] * inv_hw
            h = jnp.maximum(jnp.dot(pooled, w1t_ref[...],
                                    preferred_element_type=jnp.float32), 0.0)
            s = jax.nn.sigmoid(jnp.dot(h, w2t_ref[...],
                                       preferred_element_type=jnp.float32))
            scale_ref[...] = s[:, None, :].astype(scale_ref.dtype)   # (TB, 1, C)

    scale = pl.pallas_call(
        pool_kernel,
        out_shape=jax.ShapeDtypeStruct((B, 1, C), x.dtype),
        grid_spec=pltpu.PrefetchScalarGridSpec(
            num_scalar_prefetch=0,
            grid=(nb, nk),
            in_specs=[
                pl.BlockSpec((TB, C, HWC), lambda b, k: (b, 0, k)),
                pl.BlockSpec((C, Nse), lambda b, k: (0, 0)),
                pl.BlockSpec((Nse, C), lambda b, k: (0, 0)),
            ],
            out_specs=pl.BlockSpec((TB, 1, C), lambda b, k: (b, 0, 0)),
            scratch_shapes=[pltpu.VMEM((TB, C), jnp.float32)],
        ),
        compiler_params=pltpu.CompilerParams(
            dimension_semantics=("parallel", "arbitrary"),
            vmem_limit_bytes=vmem_limit),
    )(x_flat, w1t, w2t)

    def rescale_kernel(scale_ref, x_ref, o_ref):
        s = scale_ref[...][:, 0, :]                            # (TB, C)
        o_ref[...] = x_ref[...] * s[:, :, None].astype(o_ref.dtype)

    out_flat = pl.pallas_call(
        rescale_kernel,
        out_shape=jax.ShapeDtypeStruct((B, C, HW), x.dtype),
        grid_spec=pltpu.PrefetchScalarGridSpec(
            num_scalar_prefetch=0,
            grid=(nb, nk),
            in_specs=[
                pl.BlockSpec((TB, 1, C), lambda b, k: (b, 0, 0)),   # invariant per batch tile
                pl.BlockSpec((TB, C, HWC), lambda b, k: (b, 0, k)),
            ],
            out_specs=pl.BlockSpec((TB, C, HWC), lambda b, k: (b, 0, k)),
        ),
        compiler_params=pltpu.CompilerParams(
            dimension_semantics=("parallel", "parallel"),
            vmem_limit_bytes=vmem_limit),
    )(scale, x_flat)
    return out_flat.reshape(B, C, H, W)


def se_block_ref(x, w1, w2):
    # Pure-JAX reference mirroring the PyTorch forward.
    pooled = jnp.mean(x, axis=(2, 3))                          # (B, C)
    h = jnp.maximum(pooled @ w1.T, 0.0)                        # (B, Nse)
    s = jax.nn.sigmoid(h @ w2.T)                               # (B, C)
    return x * s[:, :, None, None]


if __name__ == "__main__":
    key = jax.random.PRNGKey(0)
    kx, k1, k2, kx2, kx3, k3, k4 = jax.random.split(key, 7)

    # Primary: small shapes consistent with the module (Ne = C).
    B, C, H, W, Nse = 2, 4, 16, 16, 2
    x = jax.random.normal(kx, (B, C, H, W), dtype=jnp.float32)
    w1 = jax.random.uniform(k1, (Nse, C), jnp.float32,
                            minval=-1.0, maxval=1.0) / jnp.sqrt(C)
    w2 = jax.random.uniform(k2, (C, Nse), jnp.float32,
                            minval=-1.0, maxval=1.0) / jnp.sqrt(Nse)
    out = se_block(x, w1, w2)
    jax.block_until_ready(out)
    assert out.shape == (B, C, H, W)
    assert jnp.allclose(out, se_block_ref(x, w1, w2), atol=1e-5, rtol=1e-5)

    # Fused path with a non-multiple-of-128 spatial size (masked tail store,
    # no wrapper padding).
    x2 = jax.random.normal(kx2, (2, 4, 15, 15), dtype=jnp.float32)
    out2 = se_block(x2, w1, w2)
    jax.block_until_ready(out2)
    assert jnp.allclose(out2, se_block_ref(x2, w1, w2), atol=1e-5, rtol=1e-5)

    # Spatially-chunked fallback, forced at a small shape (ragged HW chunk).
    C3, Nse3 = 8, 4
    x3 = jax.random.normal(kx3, (2, C3, 15, 15), dtype=jnp.float32)
    w13 = jax.random.uniform(k3, (Nse3, C3), jnp.float32,
                             minval=-1.0, maxval=1.0) / jnp.sqrt(C3)
    w23 = jax.random.uniform(k4, (C3, Nse3), jnp.float32,
                             minval=-1.0, maxval=1.0) / jnp.sqrt(Nse3)
    out3 = se_block(x3, w13, w23, force_hw_chunk=128)
    jax.block_until_ready(out3)
    assert jnp.allclose(out3, se_block_ref(x3, w13, w23), atol=1e-5, rtol=1e-5)

    print("KERNEL_OK")
</pallas_src>

<mosaic_0001>
module attributes {stable_mosaic.version = 11 : i64} {
  func.func @fused_kernel(%arg0: i32, %arg1: memref<1x4x256xf32, #tpu.memory_space<vmem>>, %arg2: memref<4x2xf32, #tpu.memory_space<vmem>>, %arg3: memref<2x4xf32, #tpu.memory_space<vmem>>, %arg4: memref<1x4x256xf32, #tpu.memory_space<vmem>>) attributes {dimension_semantics = [#tpu.dimension_semantics<parallel>], iteration_bounds = array<i64: 2>, scalar_prefetch = 0 : i64, scratch_operands = 0 : i64, tpu.core_type = #tpu.core_type<tc>, window_params = [{transform_indices = @transform_0, window_bounds = array<i64: 1, 4, 256>}, {pipeline_mode = #tpu.pipeline_mode<synchronous>, transform_indices = @transform_1, window_bounds = array<i64: 4, 2>}, {pipeline_mode = #tpu.pipeline_mode<synchronous>, transform_indices = @transform_2, window_bounds = array<i64: 2, 4>}, {transform_indices = @transform_3, window_bounds = array<i64: 1, 4, 256>}]} {
    %c0 = arith.constant 0 : index
    %c0_0 = arith.constant 0 : index
    %c0_1 = arith.constant 0 : index
    %0 = vector.load %arg1[%c0, %c0_0, %c0_1] : memref<1x4x256xf32, #tpu.memory_space<vmem>>, vector<1x4x256xf32>
    %cst = arith.constant dense<0.000000e+00> : vector<1x4xf32>
    %1 = vector.multi_reduction <add>, %0, %cst [2] : vector<1x4x256xf32> to vector<1x4xf32>
    %cst_2 = arith.constant 3.906250e-03 : f32
    %2 = vector.broadcast %cst_2 : f32 to vector<1x4xf32>
    %3 = arith.mulf %1, %2 : vector<1x4xf32>
    %c0_3 = arith.constant 0 : index
    %c0_4 = arith.constant 0 : index
    %4 = vector.load %arg2[%c0_3, %c0_4] : memref<4x2xf32, #tpu.memory_space<vmem>>, vector<4x2xf32>
    %cst_5 = arith.constant dense<0.000000e+00> : vector<1x2xf32>
    %5 = tpu.matmul %3, %4, %cst_5 {dimension_numbers = #tpu.dot_dimension_numbers<[1], [0], [0], [1], [0, 0, 1, 1], [], []>} : vector<1x4xf32>, vector<4x2xf32>, vector<1x2xf32> -> vector<1x2xf32>
    %cst_6 = arith.constant 0.000000e+00 : f32
    %6 = vector.broadcast %cst_6 : f32 to vector<1x2xf32>
    %7 = arith.maximumf %5, %6 : vector<1x2xf32>
    %c0_7 = arith.constant 0 : index
    %c0_8 = arith.constant 0 : index
    %8 = vector.load %arg3[%c0_7, %c0_8] : memref<2x4xf32, #tpu.memory_space<vmem>>, vector<2x4xf32>
    %cst_9 = arith.constant dense<0.000000e+00> : vector<1x4xf32>
    %9 = tpu.matmul %7, %8, %cst_9 {dimension_numbers = #tpu.dot_dimension_numbers<[1], [0], [0], [1], [0, 0, 1, 1], [], []>} : vector<1x2xf32>, vector<2x4xf32>, vector<1x4xf32> -> vector<1x4xf32>
    %10 = arith.negf %9 : vector<1x4xf32>
    %11 = math.exp %10 : vector<1x4xf32>
    %cst_10 = arith.constant 1.000000e+00 : f32
    %12 = vector.broadcast %cst_10 : f32 to vector<1x4xf32>
    %13 = arith.addf %12, %11 : vector<1x4xf32>
    %14 = arith.divf %12, %13 : vector<1x4xf32>
    %15 = vector.shape_cast %14 : vector<1x4xf32> to vector<1x4x1xf32>
    %16 = vector.broadcast %15 : vector<1x4x1xf32> to vector<1x4x256xf32>
    %17 = arith.mulf %0, %16 : vector<1x4x256xf32>
    %c0_11 = arith.constant 0 : index
    %c0_12 = arith.constant 0 : index
    %c0_13 = arith.constant 0 : index
    %18 = vector.load %arg4[%c0_11, %c0_12, %c0_13] : memref<1x4x256xf32, #tpu.memory_space<vmem>>, vector<1x4x256xf32>
    tpu.vector_store %arg4[%c0_11, %c0_12, %c0_13], %17 {strides = array<i32>} : memref<1x4x256xf32, #tpu.memory_space<vmem>>, vector<1x4x256xf32>,
    return
  }
  func.func @transform_0(%arg0: i32) -> (i32, i32, i32) {
    %c0_i32 = arith.constant 0 : i32
    %c0_i32_0 = arith.constant 0 : i32
    %c0_i32_1 = arith.constant 0 : i32
    return %arg0, %c0_i32, %c0_i32_0 : i32, i32, i32
  }
  func.func @transform_1(%arg0: i32) -> (i32, i32) {
    %c0_i32 = arith.constant 0 : i32
    %c0_i32_0 = arith.constant 0 : i32
    %c0_i32_1 = arith.constant 0 : i32
    return %c0_i32, %c0_i32_0 : i32, i32
  }
  func.func @transform_2(%arg0: i32) -> (i32, i32) {
    %c0_i32 = arith.constant 0 : i32
    %c0_i32_0 = arith.constant 0 : i32
    %c0_i32_1 = arith.constant 0 : i32
    return %c0_i32, %c0_i32_0 : i32, i32
  }
  func.func @transform_3(%arg0: i32) -> (i32, i32, i32) {
    %c0_i32 = arith.constant 0 : i32
    %c0_i32_0 = arith.constant 0 : i32
    %c0_i32_1 = arith.constant 0 : i32
    return %arg0, %c0_i32, %c0_i32_0 : i32, i32, i32
  }
}

</mosaic_0001>

<bundles_post_ra>
// kernel: tpu_custom_call.1
= control target key start
LH: loop header
LB: loop body
LE: loop exit
PB: predicated region body
PF: predicated region fallthrough
CT: control target
= control target key end

     0   :  { %8 = vsyncpa [#allocation3], 0  ;;  %s854_s0 = inlined_call_operand.hbm [shape: f32[2,4,256], index: 0, kind: input, shape index: {}]   ;;  %s855_s1 = inlined_call_operand.vmem [shape: f32[4,2], index: 1, kind: input, shape index: {}]   ;;  %s856_s2 = inlined_call_operand.vmem [shape: f32[2,4], index: 2, kind: input, shape index: {}]   ;;  %s857_s3 = inlined_call_operand.hbm [shape: f32[2,4,256], index: 3, kind: output, shape index: {}]  }
   0x1   :  { %10 = vsyncpa [#allocation3 + $0x1], 0 }
   0x2   :  { %11 = vsyncpa [#allocation4], 0 }
   0x3   :  { %13 = vsyncpa [#allocation4 + $0x1], 0  ;;  %s683_s12 = smov 0   ;;  %s685_s13 = smov 0  }
   0x4   :  { %s687_s14 = smov 0   ;;  %s689_s15 = smov 0  }
   0x5 LB: > { %s704_s16 = sadd.s32 4294967295, %s656_s15   ;;  %s471_s17 = sadd.s32 4294967294, %s656_s15   ;;  %s656_s15 = sphi %s689_s15, %s872_s15   ;;  %s652_s14 = sphi %s687_s14, %s871_s14   ;;  %s648_s13 = sphi %s685_s13, %s870_s13   ;;  %s644_s12 = sphi %s683_s12, %s869_s12  }
   0x6   : > { %s708_s18 = sadd.s32 1, %s656_s15   ;;  %s26_s19 = sadd.s32 1, %s652_s14 }
   0x7   : > { %s23_s20 = ssub.s32 %s656_s15, %s708_s18  ;;  %p33_p0 = scmp.ne.s32.totalorder %s652_s14, %s648_s13 }
   0x8   : > { %p24_p1 = scmp.eq.s32.totalorder %s23_s20, 0  ;;  %p34_p2 = scmp.eq.s32.totalorder %s656_s15, 0 }
   0x9   : > { %p39_p3 = scmp.ne.s32.totalorder %s648_s13, %s644_s12  ;;  %p40_p4 = scmp.eq.s32.totalorder %s704_s16, 0 }
   0xa   : > { %s720_s21 = scalar_select %p24_p1, %s652_s14, %s26_s19  }
   0xb   : > { %p722_p5 = por %p34_p2, %p33_p0  ;;  %p726_p6 = por %p40_p4, %p39_p3 }
   0xc   : > { %p105_p7 = scmp.eq.s32.totalorder %s704_s16, 1  ;;  %p111_p8 = scmp.eq.s32.totalorder %s471_s17, 1 }
   0xd   : > { %p518_p10 = scmp.lt.s32.totalorder %s656_s15, 2  ;;  %s137_s26 = sand.u32 1, %s652_s14  }
   0xe   : > { %p733_p11 = por %p105_p7, %p33_p0  ;;  %p737_p12 = por %p111_p8, %p39_p3 }
   0xf   : > { %s490_s27 = sshll.u32 %s656_s15, 7  ;;  %s474_s28 = sshll.u32 %s137_s26, 3 }
  0x10   : > { %s861_s24 = scalar_select %p733_p11, 1, 0 }
  0x11   : > { %s862_s25 = scalar_select %p737_p12, 1, 0 }
  0x12   : > { %s746_s4 = scalar_lea.hbm %s854_s0, %s490_s27  ;;  %s141_s5 = scalar_lea.vmem [#allocation2], %s474_s28 }
  0x13   : > { %s149_s6 = sshll.u32 %s141_s5, 4  ;;  %p750_p13 = pnand %p518_p10, %p722_p5  ;;  %s754_s6 = int_to_ptr.vmem [resolvable:$true] %s149_s6 }
  0x14   : > { %s138_s8 = scalar_lea.sflag [#allocation3], %s137_s26  ;;  %s560_s9 = scalar_lea.hbm %s746_s4, 128 }
  0x15   : > { %p561_p2 = scmp.ne.s32.totalorder %s746_s4, %s560_s9  ;;  %p562_p3 = pneg %p750_p13 }
  0x16   : > { %s565_s17 = scalar_lea.hbm %s854_s0, 256  ;;  %p566_p5 = scmp.lt.u32.totalorder %s746_s4, %s854_s0 }
  0x17   : > { %p563_p4 = pnand %p562_p3, %p561_p2  ;;  %p567_p8 = scmp.lt.u32.totalorder %s565_s17, %s560_s9 }
  0x18   : > { %p569_p9 = scmp.lt.u32.totalorder %s560_s9, %s746_s4 }
  0x19   : > { %p564_p7 = pneg %p563_p4  ;;  %p568_p10 = por %p567_p8, %p566_p5 }
  0x1b   : > { %p570_p0 = por %p569_p9, %p568_p10 }
  0x1d   : > { %p571_p1 = pnand %p570_p0, %p564_p7 }
  0x1f   : > { %574 = shalt.err (!%p571_p1)
}
  0x20   : > { %s575_s22 = scalar_lea.vmem %s754_s6, 128  ;;  %s658_s26 = smov [#allocation2]  }
  0x21   : > { %p576_p2 = scmp.ne.s32.totalorder %s754_s6, %s575_s22  ;;  %s580_s27 = sshll.u32 %s658_s26, 4  ;;  %s581_s27 = int_to_ptr.vmem [resolvable:$false] %s580_s27 }
  0x22   : > { %s582_s28 = scalar_lea.vmem %s581_s27, 256  ;;  %p583_p11 = scmp.lt.s32.totalorder %s754_s6, %s581_s27 }
  0x23   : > { %p578_p4 = pnand %p576_p2, %p562_p3  ;;  %p584_p5 = scmp.lt.s32.totalorder %s582_s28, %s575_s22 }
  0x25   : > { %p579_p12 = pneg %p578_p4  ;;  %p585_p8 = por %p584_p5, %p583_p11 }
  0x27   : > { %p586_p9 = pnand %p585_p8, %p579_p12 }
  0x29   : > { %589 = shalt.err (!%p586_p9)
}
  0x2a   : > { %513 = dma.hbm_to_vmem [thread:$0]  (!%p750_p13), %s746_s4, 128, %s754_s6, %s138_s8  }
  0x2b   : > { %p864_p0 = scmp.lt.s32.totalorder %s656_s15, 3  ;;  %p865_p1 = scmp.ge.s32.totalorder %s656_s15, 1 }
  0x2d   : > { %p155_p3 = pnand %p865_p1, %p864_p0 }
  0x2e   : > { %s788_s29 = sand.u32 (!%p155_p3), 1, %s648_s13  }
  0x2f   : > { %158 = sbr.rel (%p155_p3) target bundleno = 794 (0x31a), region = 32  ;;  %s478_s30 = sshll.u32 (!%p155_p3), %s788_s29, 3 }
  0x30   : > { %s161_s5 = scalar_lea.sflag (!%p155_p3), [#allocation3], %s788_s29  ;;  %s164_s7 = scalar_lea.vmem (!%p155_p3), [#allocation2], %s478_s30 }
  0x36   : > { %635 = dma.done.wait (%p726_p6), %s161_s5, 128  }
  0x37   : > { %637 = vsyncadd (%p726_p6), %s161_s5, 4294967168  ;;  %vm191_vm0 = vcmask 1043456   ;;  %v187_v0 = vld [vmem:[%s164_s7] sm:$0xff]  ;;  %v659_v5 = vmov 0.0   ;;  %vm660_vm1 = vmmov 0   ;;  %v200_v7 = vlaneseq  ;;  %s491_s9 = sshll.u32 %s704_s16, 7 }
  0x38   : > { %v189_v1 = vcombine.high %v187_v0, %v187_v0  ;;  %v192_v2 = vsel %vm191_vm0, %v187_v0, 0.0  ;;  %496 = vmatprep.subr.mxu0 %v659_v5  ;;  %v198_v6 = vld [vmem:[%s855_s1] sm:$0xf]  ;;  %501 = vmatprep.subr.mxu1 %v659_v5  ;;  %vm206_vm2 = vcmask 31744   ;;  %vm288_vm3 = vcmask 1041408   ;;  %s186_s10 = scalar_lea.vmem [#allocation5], %s478_s30  ;;  %s810_s20 = scalar_lea.hbm %s857_s3, %s491_s9 }
  0x39   : > { %497 = vmatpush3.msk.msra.mxu0 %vm191_vm0, %v198_v6  ;;  %498 = vmatprep.mubr.msk.f32.mxu0 %vm660_vm1, %v659_v5  ;;  %v201_v8 = vand.u32 127, %v200_v7  ;;  %v203_v9 = vshrl.u32 %v200_v7, 7  ;;  %v283_v14 = vld [vmem:[%s856_s2] sm:$0x3]  ;;  %vm284_vm4 = vcmask 15360   ;;  %s401_s11 = sshll.u32 %s186_s10, 4  ;;  %s812_s11 = int_to_ptr.vmem [resolvable:$true] %s401_s11 }
  0x3a   : > { %v193_v3 = vsel %vm191_vm0, %v189_v1, 0.0  ;;  %503 = vmatprep.mubr.msk.f32.mxu1 %vm660_vm1, %v659_v5  ;;  %502 = vmatpush3.msk.msra.mxu1 %vm288_vm3, %v283_v14  ;;  %v661_v26 = vmov 839922192   ;;  %s387_s22 = scalar_lea.sflag [#allocation4], %s788_s29  ;;  %s590_s26 = scalar_lea.vmem %s812_s11, 128 }
  0x3b   : > { %v194_v4 = vadd.f32 %v193_v3, %v192_v2  ;;  %v204_v10 = vsub.s32 %v201_v8, %v203_v9  ;;  %v370_v23 = vsub.s32 0, %v203_v9  ;;  %v377_v27 = vunpack.c.l.s4 %v661_v26  ;;  %p591_p6 = scmp.ne.s32.totalorder %s812_s11, %s590_s26  ;;  %p866_p11 = scmp.ne.s32.totalorder %s861_s24, 0 }
  0x3c   : > { %s662_s16 = smov [#allocation5]  }
  0x3d   : > { %195 = vadd.xlane.f32.xlu0 %v194_v4  ;;  %v378_v28 = vunpack.c.0.s8 %v377_v27  ;;  %p592_p12 = pnand %p591_p6, %p866_p11  ;;  %s594_s27 = sshll.u32 %s662_s16, 4  ;;  %s595_s27 = int_to_ptr.vmem [resolvable:$false] %s594_s27 }
  0x3e   : > { %s596_s28 = scalar_lea.vmem %s595_s27, 256  ;;  %p597_p7 = scmp.lt.s32.totalorder %s812_s11, %s595_s27 }
  0x3f   : > { %v381_v29 = vsub.s32 %v378_v28, %v203_v9  ;;  %p593_p13 = pneg %p592_p12  ;;  %p598_p10 = scmp.lt.s32.totalorder %s596_s28, %s590_s26 }
  0x41   : > { %p599_p2 = por %p598_p10, %p597_p7 }
  0x43   : > { %p600_p4 = pnand %p599_p2, %p593_p13 }
  0xca   : > { %v196_v11 = vpop.xlane.xlu0 %195 }
  0xcb   : > { %v197_v12 = vmul.f32 0.00390625, %v196_v11 }
  0xcd   : > { %v205_v13 = vrot.slane %v197_v12, %v204_v10 }
  0xcf   : > { %499 = vmatmul.mubr.msk.f32.vlgmr.msra.gmra.mrb[0].mxu0 %vm206_vm2, %v205_v13 }
 0x1a2   : > { %v278_v15 = vpop.f32.mrb[0].mxu0 }
 0x1a3   : > { %v282_v16 = vmax.f32 %v278_v15, 0.0  ;;  %v500_v17 = vpop.f32.mrb[1].mxu0 }
 0x1a5   : > { %504 = vmatmul.mubr.msk.f32.vlgmr.msra.gmra.mrb[0].mxu1 %vm284_vm4, %v282_v16 }
 0x278   : > { %v358_v18 = vpop.f32.mrb[0].mxu1 }
 0x279   : > { %v484_v19 = vmul.f32 -1.442695, %v358_v18  ;;  %v505_v20 = vpop.f32.mrb[1].mxu1 }
 0x27b   : > { %556 = vpow2.f32 %v484_v19 }
 0x285   : > { %v557_v21 = vpop.eup %556 }
 0x286   : > { %v365_v22 = vadd.f32 1.0, %v557_v21 }
 0x288   : > { %558 = vrcp.f32 %v365_v22 }
 0x292   : > { %v559_v24 = vpop.eup %558 }
 0x293   : > { %v371_v25 = vrot.slane %v559_v24, %v370_v23 }
 0x295   : > { %373 = vbcast.lane.b32.xlu0 %v371_v25, 256 }
 0x307   : > { %v374_v30 = vpop.permute.xlu0 %373 }
 0x308   : > { %v382_v31 = vrot.slane %v374_v30, %v381_v29 }
 0x30a   : > { %v384_v32 = vmul.f32 %v382_v31, %v187_v0 }
 0x30c   : > { %385 = vst [vmem:[%s186_s10] sm:$0xff] %v384_v32 }
 0x30d   : > { %603 = shalt.err (!%p600_p4)
}
 0x30e   : > { %s604_s29 = scalar_lea.hbm %s810_s20, 128  ;;  %s608_s7 = scalar_lea.hbm %s857_s3, 256 }
 0x30f   : > { %p605_p5 = scmp.ne.s32.totalorder %s810_s20, %s604_s29  ;;  %p609_p0 = scmp.lt.u32.totalorder %s810_s20, %s857_s3 }
 0x310   : > { %p610_p1 = scmp.lt.u32.totalorder %s608_s7, %s604_s29  ;;  %p612_p6 = scmp.lt.u32.totalorder %s604_s29, %s810_s20 }
 0x311   : > { %p606_p8 = pnand %p605_p5, %p866_p11 }
 0x312   : > { %p611_p3 = por %p610_p1, %p609_p0 }
 0x313   : > { %p607_p9 = pneg %p606_p8 }
 0x314   : > { %p613_p12 = por %p612_p6, %p611_p3 }
 0x316   : > { %p614_p13 = pnand %p613_p12, %p607_p9 }
 0x318   : > { %617 = shalt.err (!%p614_p13)
}
 0x319   : > { %508 = dma.vmem_to_hbm [thread:$0]  (%p866_p11), %s812_s11, 128, %s810_s20, %s387_s22  }
 0x31a PF: > { %s413_s23 = sand.u32 1, %s644_s12   ;;  %p867_p7 = scmp.ne.s32.totalorder %s862_s25, 0 }
 0x31b   : > { %p868_p10 = scmp.ge.s32.totalorder %s656_s15, 2  ;;  %s414_s8 = scalar_lea.sflag [#allocation4], %s413_s23 }
 0x31d   : > { %p515_p2 = pnand %p868_p10, %p867_p7 }
 0x31f   : > { %639 = dma.done.wait (!%p515_p2), %s414_s8, 128  }
 0x320   : > { %641 = vsyncadd (!%p515_p2), %s414_s8, 4294967168  ;;  %p16_p4 = scmp.ge.s32.totalorder %s708_s18, 4   ;;  %s869_s12 = smov %s648_s13 }
 0x321   : > { %s870_s13 = smov %s652_s14  ;;  %s871_s14 = smov %s720_s21 }
 0x322   : > { %s872_s15 = smov %s708_s18  ;;  %18 = sbr.rel (!%p16_p4) target bundleno = 5 (0x5), region = 77 }
 0x329   :  { %419 = vsyncpa [#allocation3], 1 }
 0x32a   :  { %421 = vsyncpa [#allocation3 + $0x1], 1 }
 0x32b   :  { %422 = vsyncpa [#allocation4], 1 }
 0x32c   :  { %424 = vsyncpa [#allocation4 + $0x1], 1 }

</bundles_post_ra>
